<compile_context>
chip_gen: v5e
topology: v5e:2x2
jax: 0.10.0
libtpu: 0.0.40
codegen_flags: <defaults>
</compile_context>

<pallas_src>
import jax
import jax.numpy as jnp
from jax.experimental import pallas as pl
from jax.experimental.pallas import tpu as pltpu


def _round_up(x, m):
    return -(-x // m) * m


def _cdiv(a, b):
    return -(-a // b)


def _neg_log_sigmoid(x):
    # -log(sigmoid(x)) = log1p(exp(-|x|)) - min(x, 0)   (numerically stable)
    return jnp.log1p(jnp.exp(-jnp.abs(x))) - jnp.minimum(x, 0.0)


def _make_skipgram_kernel(tb, num_neg, batch, padded_batch):
    """tb: batch-tile rows; num_neg: K negatives; batch/padded_batch: B, Bp."""
    mask_padded = padded_batch != batch

    def skipgram_kernel(t_ref, c_ref, neg_ref, loss_ref):
        # t_ref   : (TB, Dp)     bf16   target embeddings
        # c_ref   : (TB, Dp)     bf16   positive-context embeddings
        # neg_ref : (K, TB, Dp)  bf16   negative-sample embeddings
        # loss_ref: (TB, 1)      f32    per-row loss (padded rows -> 0)
        t = t_ref[...].astype(jnp.float32)
        c = c_ref[...].astype(jnp.float32)
        pos = jnp.sum(t * c, axis=-1, keepdims=True)            # (TB, 1)
        acc = _neg_log_sigmoid(pos)                              # -logsig(+pos)
        for k in range(num_neg):                                 # small, static
            n = neg_ref[k].astype(jnp.float32)                   # (TB, Dp)
            s = jnp.sum(t * n, axis=-1, keepdims=True)           # (TB, 1)
            acc = acc + _neg_log_sigmoid(-s)                     # -logsig(-neg)
        if mask_padded:
            row = (pl.program_id(0) * tb
                   + jax.lax.broadcasted_iota(jnp.int32, (tb, 1), 0))
            acc = jnp.where(row < batch, acc, 0.0)
        loss_ref[...] = acc

    return skipgram_kernel


def skipgram_forward(target_table, context_table,
                     target_words, context_words, negative_samples):
    """target_words: (B,) int32, context_words: (B,) int32,
    negative_samples: (B, K) int32. Returns scalar f32 loss."""
    B = target_words.shape[0]
    K = negative_samples.shape[1]
    V, D = target_table.shape

    # ---- Cast tables (not streams) to bf16 when the gathered stream is the
    # larger object: halves gather-side HBM reads and removes the cast pass
    # over the (K+2)*B*D stream.  Otherwise cast the (smaller) streams.
    if (K + 2) * B > V:
        target_table = target_table.astype(jnp.bfloat16)
        context_table = context_table.astype(jnp.bfloat16)

    # ---- Embedding lookups (XLA glue; see TODO above re: in-kernel gather).
    # .astype(bf16) is a no-op if the tables were already cast.
    t = jnp.take(target_table, target_words, axis=0).astype(jnp.bfloat16)    # (B, D)
    c = jnp.take(context_table, context_words, axis=0).astype(jnp.bfloat16)  # (B, D)
    neg = jnp.take(context_table, negative_samples.T,
                   axis=0).astype(jnp.bfloat16)                              # (K, B, D)

    # ---- Tiling.  D padded to a lane multiple (zero pads don't change dots).
    # TB multiple of 16 (bf16 sublane packing), capped so double-buffered
    # inputs (≈ 4*(K+2)*TB*Dp bytes) stay within a ~16 MiB budget (safe on
    # v5e/v6e/v7x), capped at 1024 rows, and chosen so there are >=2 tiles
    # whenever B allows it (both v7x TensorCores get work).
    Dp = _round_up(D, 128)
    vmem_input_budget = 16 * 1024 * 1024
    tb_cap = max(16, (vmem_input_budget // (4 * (K + 2) * Dp)) // 16 * 16)
    TB = max(16, min(tb_cap, 1024, _round_up(_cdiv(B, 2), 16)))
    num_tiles = _cdiv(B, TB)
    Bp = num_tiles * TB

    pad_b, pad_d = Bp - B, Dp - D
    if pad_b or pad_d:
        t = jnp.pad(t, ((0, pad_b), (0, pad_d)))
        c = jnp.pad(c, ((0, pad_b), (0, pad_d)))
        neg = jnp.pad(neg, ((0, 0), (0, pad_b), (0, pad_d)))

    kernel = _make_skipgram_kernel(TB, K, B, Bp)

    per_row = pl.pallas_call(
        kernel,
        out_shape=jax.ShapeDtypeStruct((Bp, 1), jnp.float32),
        grid_spec=pltpu.PrefetchScalarGridSpec(
            num_scalar_prefetch=0,
            grid=(num_tiles,),
            in_specs=[
                pl.BlockSpec((TB, Dp), lambda i: (i, 0)),
                pl.BlockSpec((TB, Dp), lambda i: (i, 0)),
                pl.BlockSpec((K, TB, Dp), lambda i: (0, i, 0)),
            ],
            out_specs=pl.BlockSpec((TB, 1), lambda i: (i, 0)),
        ),
        compiler_params=pltpu.CompilerParams(
            dimension_semantics=("parallel",),
            vmem_limit_bytes=32 * 1024 * 1024,
        ),
        cost_estimate=pl.CostEstimate(
            flops=2 * Bp * (K + 1) * Dp,
            transcendentals=2 * Bp * (K + 1),
            bytes_accessed=(K + 2) * Bp * Dp * 2 + Bp * 4,
        ),
    )(t, c, neg)

    # Padded rows were masked to zero in-kernel; plain mean over real rows.
    return jnp.sum(per_row) / B


if __name__ == "__main__":
    vocab_size = 256
    embedding_dim = 128
    batch = 20            # ragged vs. TB=16 -> exercises padding + masking
    num_neg = 5

    key = jax.random.PRNGKey(0)
    k_t, k_c, k_tw, k_cw, k_ns = jax.random.split(key, 5)

    # torch.nn.Embedding default init is N(0, 1)
    target_table = jax.random.normal(k_t, (vocab_size, embedding_dim),
                                     dtype=jnp.float32)
    context_table = jax.random.normal(k_c, (vocab_size, embedding_dim),
                                      dtype=jnp.float32)

    target_words = jax.random.randint(k_tw, (batch,), 0, vocab_size,
                                      dtype=jnp.int32)
    context_words = jax.random.randint(k_cw, (batch,), 0, vocab_size,
                                       dtype=jnp.int32)
    negative_samples = jax.random.randint(k_ns, (batch, num_neg), 0,
                                          vocab_size, dtype=jnp.int32)

    loss = skipgram_forward(target_table, context_table,
                            target_words, context_words, negative_samples)
    jax.block_until_ready(loss)

    # Pure-JAX reference using the same bf16-cast embedding streams the
    # kernel consumes (all math in f32, matching the kernel).
    def _bf16(x):
        return x.astype(jnp.bfloat16).astype(jnp.float32)

    t_r = _bf16(jnp.take(target_table, target_words, axis=0))
    c_r = _bf16(jnp.take(context_table, context_words, axis=0))
    n_r = _bf16(jnp.take(context_table, negative_samples, axis=0))
    pos_score = jnp.sum(t_r * c_r, axis=-1)
    neg_score = jnp.einsum("bkd,bd->bk", n_r, t_r)
    ref = jnp.mean(-jax.nn.log_sigmoid(pos_score)
                   - jnp.sum(jax.nn.log_sigmoid(-neg_score), axis=-1))
    assert jnp.allclose(loss, ref, rtol=1e-4, atol=1e-4), (loss, ref)

    print("KERNEL_OK")
</pallas_src>

<mosaic_0001>
module attributes {stable_mosaic.version = 11 : i64} {
  func.func @skipgram_kernel(%arg0: i32, %arg1: memref<16x128xbf16, #tpu.memory_space<vmem>>, %arg2: memref<16x128xbf16, #tpu.memory_space<vmem>>, %arg3: memref<5x16x128xbf16, #tpu.memory_space<vmem>>, %arg4: memref<16x1xf32, #tpu.memory_space<vmem>>) attributes {dimension_semantics = [#tpu.dimension_semantics<parallel>], iteration_bounds = array<i64: 2>, scalar_prefetch = 0 : i64, scratch_operands = 0 : i64, tpu.core_type = #tpu.core_type<tc>, window_params = [{transform_indices = @transform_0, window_bounds = array<i64: 16, 128>}, {transform_indices = @transform_1, window_bounds = array<i64: 16, 128>}, {transform_indices = @transform_2, window_bounds = array<i64: 5, 16, 128>}, {transform_indices = @transform_3, window_bounds = array<i64: 16, 1>}]} {
    %c0 = arith.constant 0 : index
    %c0_0 = arith.constant 0 : index
    %0 = vector.load %arg1[%c0, %c0_0] : memref<16x128xbf16, #tpu.memory_space<vmem>>, vector<16x128xbf16>
    %1 = arith.extf %0 : vector<16x128xbf16> to vector<16x128xf32>
    %c0_1 = arith.constant 0 : index
    %c0_2 = arith.constant 0 : index
    %2 = vector.load %arg2[%c0_1, %c0_2] : memref<16x128xbf16, #tpu.memory_space<vmem>>, vector<16x128xbf16>
    %3 = arith.extf %2 : vector<16x128xbf16> to vector<16x128xf32>
    %4 = arith.mulf %1, %3 : vector<16x128xf32>
    %cst = arith.constant dense<0.000000e+00> : vector<16xf32>
    %5 = vector.multi_reduction <add>, %4, %cst [1] : vector<16x128xf32> to vector<16xf32>
    %6 = vector.shape_cast %5 : vector<16xf32> to vector<16x1xf32>
    %7 = math.absf %6 : vector<16x1xf32>
    %cst_3 = arith.constant 0.000000e+00 : f32
    %8 = vector.broadcast %cst_3 : f32 to vector<16x1xf32>
    %9 = arith.subf %8, %7 : vector<16x1xf32>
    %10 = math.exp %9 : vector<16x1xf32>
    %11 = math.log1p %10 : vector<16x1xf32>
    %cst_4 = arith.constant 0.000000e+00 : f32
    %12 = vector.broadcast %cst_4 : f32 to vector<16x1xf32>
    %13 = arith.minimumf %6, %12 : vector<16x1xf32>
    %14 = arith.subf %11, %13 : vector<16x1xf32>
    %c0_5 = arith.constant 0 : index
    %c0_6 = arith.constant 0 : index
    %c0_7 = arith.constant 0 : index
    %15 = vector.load %arg3[%c0_5, %c0_6, %c0_7] : memref<5x16x128xbf16, #tpu.memory_space<vmem>>, vector<1x16x128xbf16>
    %16 = vector.shape_cast %15 : vector<1x16x128xbf16> to vector<16x128xbf16>
    %17 = arith.extf %16 : vector<16x128xbf16> to vector<16x128xf32>
    %18 = arith.mulf %1, %17 : vector<16x128xf32>
    %cst_8 = arith.constant dense<0.000000e+00> : vector<16xf32>
    %19 = vector.multi_reduction <add>, %18, %cst_8 [1] : vector<16x128xf32> to vector<16xf32>
    %20 = vector.shape_cast %19 : vector<16xf32> to vector<16x1xf32>
    %cst_9 = arith.constant 0.000000e+00 : f32
    %21 = vector.broadcast %cst_9 : f32 to vector<16x1xf32>
    %22 = arith.subf %21, %20 : vector<16x1xf32>
    %23 = math.absf %22 : vector<16x1xf32>
    %cst_10 = arith.constant 0.000000e+00 : f32
    %24 = vector.broadcast %cst_10 : f32 to vector<16x1xf32>
    %25 = arith.subf %24, %23 : vector<16x1xf32>
    %26 = math.exp %25 : vector<16x1xf32>
    %27 = math.log1p %26 : vector<16x1xf32>
    %cst_11 = arith.constant 0.000000e+00 : f32
    %28 = vector.broadcast %cst_11 : f32 to vector<16x1xf32>
    %29 = arith.minimumf %22, %28 : vector<16x1xf32>
    %30 = arith.subf %27, %29 : vector<16x1xf32>
    %31 = arith.addf %14, %30 : vector<16x1xf32>
    %c1 = arith.constant 1 : index
    %c0_12 = arith.constant 0 : index
    %c0_13 = arith.constant 0 : index
    %32 = vector.load %arg3[%c1, %c0_12, %c0_13] : memref<5x16x128xbf16, #tpu.memory_space<vmem>>, vector<1x16x128xbf16>
    %33 = vector.shape_cast %32 : vector<1x16x128xbf16> to vector<16x128xbf16>
    %34 = arith.extf %33 : vector<16x128xbf16> to vector<16x128xf32>
    %35 = arith.mulf %1, %34 : vector<16x128xf32>
    %cst_14 = arith.constant dense<0.000000e+00> : vector<16xf32>
    %36 = vector.multi_reduction <add>, %35, %cst_14 [1] : vector<16x128xf32> to vector<16xf32>
    %37 = vector.shape_cast %36 : vector<16xf32> to vector<16x1xf32>
    %cst_15 = arith.constant 0.000000e+00 : f32
    %38 = vector.broadcast %cst_15 : f32 to vector<16x1xf32>
    %39 = arith.subf %38, %37 : vector<16x1xf32>
    %40 = math.absf %39 : vector<16x1xf32>
    %cst_16 = arith.constant 0.000000e+00 : f32
    %41 = vector.broadcast %cst_16 : f32 to vector<16x1xf32>
    %42 = arith.subf %41, %40 : vector<16x1xf32>
    %43 = math.exp %42 : vector<16x1xf32>
    %44 = math.log1p %43 : vector<16x1xf32>
    %cst_17 = arith.constant 0.000000e+00 : f32
    %45 = vector.broadcast %cst_17 : f32 to vector<16x1xf32>
    %46 = arith.minimumf %39, %45 : vector<16x1xf32>
    %47 = arith.subf %44, %46 : vector<16x1xf32>
    %48 = arith.addf %31, %47 : vector<16x1xf32>
    %c2 = arith.constant 2 : index
    %c0_18 = arith.constant 0 : index
    %c0_19 = arith.constant 0 : index
    %49 = vector.load %arg3[%c2, %c0_18, %c0_19] : memref<5x16x128xbf16, #tpu.memory_space<vmem>>, vector<1x16x128xbf16>
    %50 = vector.shape_cast %49 : vector<1x16x128xbf16> to vector<16x128xbf16>
    %51 = arith.extf %50 : vector<16x128xbf16> to vector<16x128xf32>
    %52 = arith.mulf %1, %51 : vector<16x128xf32>
    %cst_20 = arith.constant dense<0.000000e+00> : vector<16xf32>
    %53 = vector.multi_reduction <add>, %52, %cst_20 [1] : vector<16x128xf32> to vector<16xf32>
    %54 = vector.shape_cast %53 : vector<16xf32> to vector<16x1xf32>
    %cst_21 = arith.constant 0.000000e+00 : f32
    %55 = vector.broadcast %cst_21 : f32 to vector<16x1xf32>
    %56 = arith.subf %55, %54 : vector<16x1xf32>
    %57 = math.absf %56 : vector<16x1xf32>
    %cst_22 = arith.constant 0.000000e+00 : f32
    %58 = vector.broadcast %cst_22 : f32 to vector<16x1xf32>
    %59 = arith.subf %58, %57 : vector<16x1xf32>
    %60 = math.exp %59 : vector<16x1xf32>
    %61 = math.log1p %60 : vector<16x1xf32>
    %cst_23 = arith.constant 0.000000e+00 : f32
    %62 = vector.broadcast %cst_23 : f32 to vector<16x1xf32>
    %63 = arith.minimumf %56, %62 : vector<16x1xf32>
    %64 = arith.subf %61, %63 : vector<16x1xf32>
    %65 = arith.addf %48, %64 : vector<16x1xf32>
    %c3 = arith.constant 3 : index
    %c0_24 = arith.constant 0 : index
    %c0_25 = arith.constant 0 : index
    %66 = vector.load %arg3[%c3, %c0_24, %c0_25] : memref<5x16x128xbf16, #tpu.memory_space<vmem>>, vector<1x16x128xbf16>
    %67 = vector.shape_cast %66 : vector<1x16x128xbf16> to vector<16x128xbf16>
    %68 = arith.extf %67 : vector<16x128xbf16> to vector<16x128xf32>
    %69 = arith.mulf %1, %68 : vector<16x128xf32>
    %cst_26 = arith.constant dense<0.000000e+00> : vector<16xf32>
    %70 = vector.multi_reduction <add>, %69, %cst_26 [1] : vector<16x128xf32> to vector<16xf32>
    %71 = vector.shape_cast %70 : vector<16xf32> to vector<16x1xf32>
    %cst_27 = arith.constant 0.000000e+00 : f32
    %72 = vector.broadcast %cst_27 : f32 to vector<16x1xf32>
    %73 = arith.subf %72, %71 : vector<16x1xf32>
    %74 = math.absf %73 : vector<16x1xf32>
    %cst_28 = arith.constant 0.000000e+00 : f32
    %75 = vector.broadcast %cst_28 : f32 to vector<16x1xf32>
    %76 = arith.subf %75, %74 : vector<16x1xf32>
    %77 = math.exp %76 : vector<16x1xf32>
    %78 = math.log1p %77 : vector<16x1xf32>
    %cst_29 = arith.constant 0.000000e+00 : f32
    %79 = vector.broadcast %cst_29 : f32 to vector<16x1xf32>
    %80 = arith.minimumf %73, %79 : vector<16x1xf32>
    %81 = arith.subf %78, %80 : vector<16x1xf32>
    %82 = arith.addf %65, %81 : vector<16x1xf32>
    %c4 = arith.constant 4 : index
    %c0_30 = arith.constant 0 : index
    %c0_31 = arith.constant 0 : index
    %83 = vector.load %arg3[%c4, %c0_30, %c0_31] : memref<5x16x128xbf16, #tpu.memory_space<vmem>>, vector<1x16x128xbf16>
    %84 = vector.shape_cast %83 : vector<1x16x128xbf16> to vector<16x128xbf16>
    %85 = arith.extf %84 : vector<16x128xbf16> to vector<16x128xf32>
    %86 = arith.mulf %1, %85 : vector<16x128xf32>
    %cst_32 = arith.constant dense<0.000000e+00> : vector<16xf32>
    %87 = vector.multi_reduction <add>, %86, %cst_32 [1] : vector<16x128xf32> to vector<16xf32>
    %88 = vector.shape_cast %87 : vector<16xf32> to vector<16x1xf32>
    %cst_33 = arith.constant 0.000000e+00 : f32
    %89 = vector.broadcast %cst_33 : f32 to vector<16x1xf32>
    %90 = arith.subf %89, %88 : vector<16x1xf32>
    %91 = math.absf %90 : vector<16x1xf32>
    %cst_34 = arith.constant 0.000000e+00 : f32
    %92 = vector.broadcast %cst_34 : f32 to vector<16x1xf32>
    %93 = arith.subf %92, %91 : vector<16x1xf32>
    %94 = math.exp %93 : vector<16x1xf32>
    %95 = math.log1p %94 : vector<16x1xf32>
    %cst_35 = arith.constant 0.000000e+00 : f32
    %96 = vector.broadcast %cst_35 : f32 to vector<16x1xf32>
    %97 = arith.minimumf %90, %96 : vector<16x1xf32>
    %98 = arith.subf %95, %97 : vector<16x1xf32>
    %99 = arith.addf %82, %98 : vector<16x1xf32>
    %c16_i32 = arith.constant 16 : i32
    %100 = arith.muli %arg0, %c16_i32 : i32
    %101 = tpu.iota {dimensions = array<i32: 0>} : vector<16x1xi32>
    %102 = vector.broadcast %100 : i32 to vector<16x1xi32>
    %103 = arith.addi %102, %101 : vector<16x1xi32>
    %c20_i32 = arith.constant 20 : i32
    %104 = vector.broadcast %c20_i32 : i32 to vector<16x1xi32>
    %105 = arith.cmpi slt, %103, %104 : vector<16x1xi32>
    %cst_36 = arith.constant 0.000000e+00 : f32
    %106 = vector.broadcast %cst_36 : f32 to vector<16x1xf32>
    %107 = arith.select %105, %99, %106 : vector<16x1xi1>, vector<16x1xf32>
    %c0_37 = arith.constant 0 : index
    %c0_38 = arith.constant 0 : index
    %108 = vector.load %arg4[%c0_37, %c0_38] : memref<16x1xf32, #tpu.memory_space<vmem>>, vector<16x1xf32>
    tpu.vector_store %arg4[%c0_37, %c0_38], %107 {strides = array<i32>} : memref<16x1xf32, #tpu.memory_space<vmem>>, vector<16x1xf32>,
    return
  }
  func.func @transform_0(%arg0: i32) -> (i32, i32) {
    %c0_i32 = arith.constant 0 : i32
    %c0_i32_0 = arith.constant 0 : i32
    return %arg0, %c0_i32 : i32, i32
  }
  func.func @transform_1(%arg0: i32) -> (i32, i32) {
    %c0_i32 = arith.constant 0 : i32
    %c0_i32_0 = arith.constant 0 : i32
    return %arg0, %c0_i32 : i32, i32
  }
  func.func @transform_2(%arg0: i32) -> (i32, i32, i32) {
    %c0_i32 = arith.constant 0 : i32
    %c0_i32_0 = arith.constant 0 : i32
    %c0_i32_1 = arith.constant 0 : i32
    return %c0_i32, %arg0, %c0_i32_0 : i32, i32, i32
  }
  func.func @transform_3(%arg0: i32) -> (i32, i32) {
    %c0_i32 = arith.constant 0 : i32
    %c0_i32_0 = arith.constant 0 : i32
    return %arg0, %c0_i32 : i32, i32
  }
}

</mosaic_0001>

<bundles_post_ra>
// kernel: tpu_custom_call.1
= control target key start
LH: loop header
LB: loop body
LE: loop exit
PB: predicated region body
PF: predicated region fallthrough
CT: control target
= control target key end

     0   :  { %8 = vsyncpa [#allocation3], 0  ;;  %s1339_s0 = inlined_call_operand.hbm [shape: bf16[32,128], index: 0, kind: input, shape index: {}]   ;;  %s1340_s1 = inlined_call_operand.hbm [shape: bf16[32,128], index: 1, kind: input, shape index: {}]   ;;  %s1341_s2 = inlined_call_operand.hbm [shape: bf16[5,32,128], index: 2, kind: input, shape index: {}]   ;;  %s1342_s3 = inlined_call_operand.vmem [shape: f32[32,1], index: 3, kind: output, shape index: {}]  }
   0x1   :  { %10 = vsyncpa [#allocation3 + $0x1], 0 }
   0x2   :  { %11 = vsyncpa [#allocation5], 0 }
   0x3   :  { %13 = vsyncpa [#allocation5 + $0x1], 0  ;;  %s987_s12 = smov 0   ;;  %s989_s13 = smov 0  }
   0x4   :  { %s991_s14 = smov 0   ;;  %s993_s15 = smov 0  }
   0x5 LB: > { %s1006_s16 = sadd.s32 4294967295, %s957_s15   ;;  %s1009_s17 = sadd.s32 1, %s957_s15   ;;  %s957_s15 = sphi %s993_s15, %s1365_s15   ;;  %s953_s14 = sphi %s991_s14, %s1364_s14   ;;  %s949_s13 = sphi %s989_s13, %s1363_s13   ;;  %s945_s12 = sphi %s987_s12, %s1362_s12  }
   0x6   : > { %s23_s18 = ssub.s32 %s957_s15, %s1009_s17  ;;  %s26_s19 = sadd.s32 1, %s953_s14 }
   0x7   : > { %p24_p0 = scmp.eq.s32.totalorder %s23_s18, 0  ;;  %p33_p1 = scmp.ne.s32.totalorder %s953_s14, %s949_s13 }
   0x8   : > { %p34_p2 = scmp.eq.s32.totalorder %s957_s15, 0  ;;  %p39_p3 = scmp.ne.s32.totalorder %s949_s13, %s945_s12 }
   0x9   : > { %s1019_s20 = scalar_select %p24_p0, %s953_s14, %s26_s19  }
   0xa   : > { %p1021_p4 = por %p34_p2, %p33_p1  ;;  %p40_p5 = scmp.eq.s32.totalorder %s1006_s16, 0 }
   0xb   : > { %p698_p7 = scmp.ge.s32.totalorder %s957_s15, 2 }
   0xc   : > { %p1026_p6 = por %p40_p5, %p39_p3  ;;  %s1032_s23 = sand.u32 (!%p698_p7), 1, %s953_s14  }
   0xd   : > { %137 = sbr.rel (%p698_p7) target bundleno = 57 (0x39), region = 16  ;;  %s1035_s24 = sshll.u32 (!%p698_p7), %s957_s15, 3 }
   0xe   : > { %s699_s25 = sshll.u32 (!%p698_p7), %s1032_s23, 3  ;;  %s150_s28 = scalar_lea.hbm (!%p698_p7), %s1339_s0, %s1035_s24 }
   0xf   : > { %s151_s29 = sshll.u32 (!%p698_p7), %s150_s28, 4  ;;  %s145_s30 = scalar_lea.vmem (!%p698_p7), [#allocation2], %s699_s25  ;;  %s152_s29 = int_to_ptr.hbm [resolvable:$true] %s151_s29 }
  0x10   : > { %s153_s4 = sshll.u32 (!%p698_p7), %s145_s30, 4  ;;  %s142_s5 = scalar_lea.sflag (!%p698_p7), [#allocation3], %s1032_s23  ;;  %s154_s4 = int_to_ptr.vmem [resolvable:$true] %s153_s4 }
  0x11   : > { %s863_s6 = sshra.s32 (!%p698_p7), %s152_s29, 4  ;;  %s869_s10 = scalar_lea.hbm (!%p698_p7), %s1339_s0, 16  ;;  %s864_s6 = int_to_ptr.hbm [resolvable:$true] %s863_s6 }
  0x12   : > { %s865_s7 = scalar_lea.hbm %s864_s6, 8  ;;  %p870_p11 = scmp.lt.s32.totalorder %s864_s6, %s1339_s0 }
  0x13   : > { %p866_p8 = scmp.ne.s32.totalorder %s864_s6, %s865_s7  ;;  %p871_p12 = scmp.lt.s32.totalorder %s869_s10, %s865_s7 }
  0x15   : > { %p867_p9 = pnand %p866_p8, %p1021_p4  ;;  %p872_p13 = por %p871_p12, %p870_p11 }
  0x17   : > { %p868_p10 = pneg %p867_p9 }
  0x19   : > { %p873_p0 = pnand %p872_p13, %p868_p10 }
  0x1b   : > { %876 = shalt.err (!%p873_p0)
}
  0x1c   : > { %s959_s18 = smov 64   ;;  %s960_s19 = smov 4  }
  0x1d   : > { %762 = dma.hbm_to_vmem [thread:$0]  (%p1021_p4), %s152_s29, 128, %s154_s4, %s142_s5, %s959_s18, %s959_s18, %s960_s19  }
  0x1e   : > { %s163_s26 = sand.u32 1, %s957_s15   ;;  %s172_s30 = scalar_lea.hbm %s1340_s1, %s1035_s24 }
  0x1f   : > { %s173_s8 = sshll.u32 %s172_s30, 4  ;;  %s167_s9 = scalar_lea.vmem [#allocation4], %s699_s25  ;;  %s174_s8 = int_to_ptr.hbm [resolvable:$true] %s173_s8 }
  0x20   : > { %s175_s6 = sshll.u32 %s167_s9, 4  ;;  %s1058_s7 = scalar_lea.sflag [#allocation5], %s163_s26  ;;  %s176_s6 = int_to_ptr.vmem [resolvable:$true] %s175_s6 }
  0x21   : > { %s891_s10 = sshra.s32 %s174_s8, 4  ;;  %s897_s5 = scalar_lea.hbm %s1340_s1, 16  ;;  %s892_s10 = int_to_ptr.hbm [resolvable:$true] %s891_s10 }
  0x22   : > { %s893_s11 = scalar_lea.hbm %s892_s10, 8  ;;  %p898_p5 = scmp.lt.s32.totalorder %s892_s10, %s1340_s1 }
  0x23   : > { %p894_p1 = scmp.ne.s32.totalorder %s892_s10, %s893_s11  ;;  %p899_p7 = scmp.lt.s32.totalorder %s897_s5, %s893_s11 }
  0x25   : > { %p895_p2 = pnand %p894_p1, %p1021_p4  ;;  %p900_p8 = por %p899_p7, %p898_p5 }
  0x27   : > { %p896_p3 = pneg %p895_p2 }
  0x29   : > { %p901_p9 = pnand %p900_p8, %p896_p3 }
  0x2b   : > { %904 = shalt.err (!%p901_p9)
}
  0x2c   : > { %763 = dma.hbm_to_vmem [thread:$0]  (%p1021_p4), %s174_s8, 128, %s176_s6, %s1058_s7, %s959_s18, %s959_s18, %s960_s19  }
  0x2d   : > { %s760_s25 = smul.u32 40, %s1032_s23  ;;  %s194_s30 = scalar_lea.hbm %s1341_s2, %s1035_s24 }
  0x2e   : > { %s764_s9 = scalar_select %p1021_p4, [#allocation0], [#allocation9] }
  0x2f   : > { %s207_s10 = sshll.u32 %s194_s30, 4  ;;  %s189_s18 = scalar_lea.vmem [#allocation6], %s760_s25  ;;  %s208_s10 = int_to_ptr.hbm [resolvable:$true] %s207_s10 }
  0x30   : > { %s199_s11 = sld [smem:[%s764_s9]]   ;;  %s209_s19 = sshll.u32 %s189_s18, 4  ;;  %s210_s19 = int_to_ptr.vmem [resolvable:$true] %s209_s19 }
  0x31   : > { %s961_s8 = smov 256   ;;  %s962_s23 = smov 128  }
  0x32   : > { %765 = sst [smem:[#allocation8]] (%p1021_p4), %s961_s8  ;;  %s963_s24 = smov 2  }
  0x33   : > { %766 = sst [smem:[#allocation8 + $0x1]] (%p1021_p4), %s962_s23  ;;  %s964_s29 = smov 64  }
  0x34   : > { %767 = sst [smem:[#allocation8 + $0x2]] (%p1021_p4), %s963_s24  ;;  %s965_s5 = smov 4  }
  0x35   : > { %768 = sst [smem:[#allocation8 + $0x3]] (%p1021_p4), %s964_s29  ;;  %s966_s12 = smov [#allocation7]  }
  0x36   : > { %s707_s6 = sshll.u32 %s199_s11, 26  ;;  %769 = sst [smem:[#allocation8 + $0x4]] (%p1021_p4), %s964_s29 }
  0x37   : > { %s708_s4 = sadd.s32 134217728, %s707_s6  ;;  %770 = sst [smem:[#allocation8 + $0x5]] (%p1021_p4), %s965_s5 }
  0x38   : > { %771 = dma.general (%p1021_p4), %s208_s10, 640, %s210_s19, %s1058_s7, %s966_s12, [#allocation8], %s708_s4, 0  }
  0x39 PF: > { %p709_p10 = scmp.ge.s32.totalorder %s957_s15, 1  ;;  %p230_p11 = scmp.lt.s32.totalorder %s957_s15, 3 }
  0x3b   : > { %p231_p12 = pnand %p709_p10, %p230_p11 }
  0x3c   : > { %s236_s27 = sand.u32 (!%p231_p12), 1, %s949_s13  }
  0x3d   : > { %234 = sbr.rel (%p231_p12) target bundleno = 261 (0x105), region = 32  ;;  %s710_s25 = sshll.u32 (!%p231_p12), %s236_s27, 3 }
  0x3e   : > { %s237_s26 = scalar_lea.sflag (!%p231_p12), [#allocation3], %s236_s27  ;;  %s240_s28 = scalar_lea.vmem (!%p231_p12), [#allocation2], %s710_s25 }
  0x42   : > { %936 = dma.done.wait (%p1026_p6), %s237_s26, 128  }
  0x43   : > { %938 = vsyncadd (%p1026_p6), %s237_s26, 4294967168  ;;  %s246_s21 = sand.u32 1, %s1006_s16   ;;  %s250_s30 = scalar_lea.vmem [#allocation4], %s710_s25 }
  0x44   : > { %s247_s7 = scalar_lea.sflag [#allocation5], %s246_s21 }
  0x45   : > { %940 = dma.done.wait (%p1026_p6), %s247_s7, 768  }
  0x46   : > { %942 = vsyncadd (%p1026_p6), %s247_s7, 4294966528  ;;  %s761_s15 = smul.u32 40, %s236_s27  ;;  %v729_v0 = vld [vmem:[%s240_s28] sm:$0xff]   ;;  %v733_v1 = vld [vmem:[%s250_s30] sm:$0xff]   ;;  %s712_s22 = sshll.u32 %s1006_s16, 1  ;;  %vm582_vm14 = vcmask 7168  }
  0x47   : > { %v731_v3 = vunpack.c.h.bf16 %v729_v0  ;;  %v735_v4 = vunpack.c.h.bf16 %v733_v1  ;;  %v730_v5 = vunpack.c.l.bf16 %v729_v0  ;;  %v734_v7 = vunpack.c.l.bf16 %v733_v1  ;;  %s722_s10 = sshll.u32 %s1006_s16, 4  ;;  %p1306_p4 = scmp.lt.s32.totalorder %s712_s22, 3 }
  0x48   : > { %s1105_s9 = scalar_lea.vmem [#allocation6], %s761_s15 }
  0x49   : > { %v737_v2 = vld [vmem:[%s1105_s9] sm:$0xff]   ;;  %v756_v8 = vld [vmem:[%s1105_s9 + $0x8] sm:$0xff]   ;;  %v312_v9 = vmul.f32 %v735_v4, %v731_v3  ;;  %v311_v11 = vmul.f32 %v734_v7, %v730_v5  ;;  %v758_v18 = vld [vmem:[%s1105_s9 + $0x18] sm:$0xff]   ;;  %s1367_s22 = smov (!%p1306_p4, %s712_s22), 3 }
  0x4a   : > { %v738_v6 = vunpack.c.l.bf16 %v737_v2  ;;  %v743_v12 = vunpack.c.h.bf16 %v756_v8  ;;  %v739_v13 = vunpack.c.h.bf16 %v737_v2  ;;  %v742_v14 = vunpack.c.l.bf16 %v756_v8  ;;  %v757_v19 = vld [vmem:[%s1105_s9 + $0x10] sm:$0xff]   ;;  %v759_v26 = vld [vmem:[%s1105_s9 + $0x20] sm:$0xff]   ;;  %s713_s18 = sshll.u32 %s1367_s22, 3 }
  0x4b   : > { %315 = vadd.xlane.f32.xlu2 %v312_v9  ;;  %313 = vadd.xlane.f32.xlu1 %v311_v11  ;;  %v750_v20 = vunpack.c.l.bf16 %v758_v18  ;;  %v746_v21 = vunpack.c.l.bf16 %v757_v19  ;;  %v747_v22 = vunpack.c.h.bf16 %v757_v19  ;;  %v755_v27 = vunpack.c.h.bf16 %v759_v26  ;;  %s301_s8 = scalar_lea.vmem %s1342_s3, %s713_s18 }
  0x4c   : > { %v351_v10 = vmul.f32 %v738_v6, %v730_v5  ;;  %v397_v15 = vmul.f32 %v743_v12, %v731_v3  ;;  %v352_v16 = vmul.f32 %v739_v13, %v731_v3  ;;  %v396_v17 = vmul.f32 %v742_v14, %v730_v5 }
  0x4d   : > { %v486_v23 = vmul.f32 %v750_v20, %v730_v5  ;;  %v441_v24 = vmul.f32 %v746_v21, %v730_v5  ;;  %v442_v25 = vmul.f32 %v747_v22, %v731_v3  ;;  %v751_v28 = vunpack.c.h.bf16 %v758_v18 }
  0x4e   : > { %353 = vadd.xlane.f32.xlu0 %v351_v10  ;;  %v754_v29 = vunpack.c.l.bf16 %v759_v26  ;;  %v532_v30 = vmul.f32 %v755_v27, %v731_v3 }
  0x4f   : > { %v487_v31 = vmul.f32 %v751_v28, %v731_v3 }
  0x50   : > { %v531_v32 = vmul.f32 %v754_v29, %v730_v5 }
  0x53   : > { %400 = vadd.xlane.f32.xlu2 %v397_v15  ;;  %398 = vadd.xlane.f32.xlu1 %v396_v17 }
  0x56   : > { %355 = vadd.xlane.f32.xlu0 %v352_v16 }
  0x5b   : > { %488 = vadd.xlane.f32.xlu2 %v486_v23  ;;  %445 = vadd.xlane.f32.xlu1 %v442_v25 }
  0x5e   : > { %443 = vadd.xlane.f32.xlu0 %v441_v24 }
  0x63   : > { %535 = vadd.xlane.f32.xlu2 %v532_v30  ;;  %533 = vadd.xlane.f32.xlu1 %v531_v32 }
  0x66   : > { %490 = vadd.xlane.f32.xlu0 %v487_v31 }
  0xbe   : > { %v1112_v33 = vpop.xlane.xlu2 %315  ;;  %v1116_v35 = vpop.xlane.xlu1 %313 }
  0xbf   : > { %v318_v37 = vand.u32 2147483647, %v1112_v33  ;;  %v317_v38 = vand.u32 2147483647, %v1116_v35  ;;  %v344_v25 = vmin.f32 %v1112_v33, 0.0 }
  0xc1   : > { %v1114_v34 = vpop.xlane.xlu0 %353  ;;  %v320_v43 = vsub.f32 0.0, %v318_v37  ;;  %v319_v44 = vsub.f32 0.0, %v317_v38  ;;  %v343_v38 = vmin.f32 %v1116_v35, 0.0 }
  0xc2   : > { %v357_v36 = vsub.f32 0.0, %v1114_v34 }
  0xc3   : > { %v323_v47 = vmul.f32 1.442695, %v320_v43  ;;  %v321_v49 = vmul.f32 1.442695, %v319_v44 }
  0xc4   : > { %v359_v40 = vand.u32 2147483647, %v357_v36  ;;  %v385_v43 = vmin.f32 %v357_v36, 0.0 }
  0xc5   : > { %815 = vpow2.f32 %v323_v47 }
  0xc6   : > { %v1121_v39 = vpop.xlane.xlu2 %400  ;;  %v1127_v42 = vpop.xlane.xlu1 %398  ;;  %v361_v46 = vsub.f32 0.0, %v359_v40  ;;  %817 = vpow2.f32 %v321_v49 }
  0xc7   : > { %v403_v48 = vsub.f32 0.0, %v1121_v39  ;;  %v402_v55 = vsub.f32 0.0, %v1127_v42 }
  0xc8   : > { %v363_v52 = vmul.f32 1.442695, %v361_v46 }
  0xc9   : > { %v1125_v41 = vpop.xlane.xlu0 %355  ;;  %v405_v54 = vand.u32 2147483647, %v403_v48  ;;  %v404_v60 = vand.u32 2147483647, %v402_v55  ;;  %v1188_v35 = vmin.f32 %v402_v55, 0.0 }
  0xca   : > { %v358_v45 = vsub.f32 0.0, %v1125_v41  ;;  %819 = vpow2.f32 %v363_v52 }
  0xcb   : > { %v407_v59 = vsub.f32 0.0, %v405_v54  ;;  %v816_v0 = vpop.eup %815  ;;  %v406_v5 = vsub.f32 0.0, %v404_v60 }
  0xcc   : > { %v360_v50 = vand.u32 2147483647, %v358_v45  ;;  %v1146_v1 = vpop.eup %817  ;;  %v334_v7 = vadd.f32 1.0, %v816_v0  ;;  %v337_v20 = vmul.f32 -0.5, %v816_v0  ;;  %v340_v27 = vand.u32 2147483647, %v816_v0 }
  0xcd   : > { %v410_v4 = vmul.f32 1.442695, %v407_v59  ;;  %v325_v9 = vadd.f32 1.0, %v1146_v1  ;;  %v408_v13 = vmul.f32 1.442695, %v406_v5  ;;  %v328_v21 = vmul.f32 -0.5, %v1146_v1 }
  0xce   : > { %v1133_v51 = vpop.xlane.xlu2 %488  ;;  %v1135_v53 = vpop.xlane.xlu1 %445  ;;  %v362_v56 = vsub.f32 0.0, %v360_v50  ;;  %v338_v32 = vadd.f32 1.0, %v337_v20  ;;  %v331_v46 = vand.u32 2147483647, %v1146_v1  ;;  %v1182_v50 = vmin.f32 %v403_v48, 0.0 }
  0xcf   : > { %v448_v58 = vsub.f32 0.0, %v1135_v53  ;;  %v492_v10 = vsub.f32 0.0, %v1133_v51  ;;  %v329_v44 = vadd.f32 1.0, %v328_v21  ;;  %v1186_v52 = vmin.f32 %v358_v45, 0.0 }
  0xd0   : > { %v365_v62 = vmul.f32 1.442695, %v362_v56  ;;  %v1150_v3 = vpop.eup %819  ;;  %vm1192_vm0 = vcmp.lt.f32.partialorder %v340_v27, 0.0004427343  ;;  %v339_v39 = vmul.f32 %v816_v0, %v338_v32  ;;  %vm1200_vm1 = vcmp.lt.f32.partialorder %v331_v46, 0.0004427343 }
  0xd1   : > { %v1140_v57 = vpop.xlane.xlu0 %443  ;;  %v450_v63 = vand.u32 2147483647, %v448_v58  ;;  %v367_v12 = vadd.f32 1.0, %v1150_v3  ;;  %v494_v17 = vand.u32 2147483647, %v492_v10  ;;  %v370_v37 = vmul.f32 -0.5, %v1150_v3 }
  0xd2   : > { %v447_v61 = vsub.f32 0.0, %v1140_v57  ;;  %821 = vpow2.f32 %v365_v62  ;;  %v373_v60 = vand.u32 2147483647, %v1150_v3  ;;  %v330_v55 = vmul.f32 %v1146_v1, %v329_v44 }
  0xd3   : > { %v452_v8 = vsub.f32 0.0, %v450_v63  ;;  %823 = vpow2.f32 %v410_v4  ;;  %v496_v29 = vsub.f32 0.0, %v494_v17  ;;  %v371_v48 = vadd.f32 1.0, %v370_v37 }
  0xd4   : > { %v449_v6 = vand.u32 2147483647, %v447_v61  ;;  %825 = vlog2.f32 %v334_v7  ;;  %vm1213_vm2 = vcmp.lt.f32.partialorder %v373_v60, 0.0004427343  ;;  %v572_v62 = vlaneseq }
  0xd5   : > { %v455_v15 = vmul.f32 1.442695, %v452_v8  ;;  %827 = vlog2.f32 %v325_v9  ;;  %v498_v36 = vmul.f32 1.442695, %v496_v29  ;;  %v372_v9 = vmul.f32 %v1150_v3, %v371_v48 }
  0xd6   : > { %v1148_v2 = vpop.xlane.xlu2 %535  ;;  %v451_v14 = vsub.f32 0.0, %v449_v6  ;;  %829 = vlog2.f32 %v367_v12  ;;  %v1204_v63 = vpop.xlane.xlu1 %533 }
  0xd7   : > { %v538_v11 = vsub.f32 0.0, %v1148_v2  ;;  %831 = vpow2.f32 %v408_v13  ;;  %v1219_v13 = vmin.f32 %v447_v61, 0.0  ;;  %v1234_v61 = vmin.f32 %v448_v58, 0.0 }
  0xd8   : > { %v1164_v19 = vpop.eup %821  ;;  %v453_v22 = vmul.f32 1.442695, %v451_v14  ;;  %833 = vpow2.f32 %v455_v15  ;;  %v537_v14 = vsub.f32 0.0, %v1204_v63 }
  0xd9   : > { %v1158_v16 = vpop.xlane.xlu0 %490  ;;  %v540_v18 = vand.u32 2147483647, %v538_v11  ;;  %v1169_v26 = vpop.eup %823  ;;  %v376_v28 = vadd.f32 1.0, %v1164_v19  ;;  %v379_v7 = vmul.f32 -0.5, %v1164_v19  ;;  %v382_v27 = vand.u32 2147483647, %v1164_v19 }
  0xda   : > { %v493_v24 = vsub.f32 0.0, %v1158_v16  ;;  %v826_v31 = vpop.eup %825  ;;  %835 = vpow2.f32 %v453_v22  ;;  %v421_v49 = vadd.f32 1.0, %v1169_v26  ;;  %v424_v5 = vmul.f32 -0.5, %v1169_v26 }
  0xdb   : > { %v542_v23 = vsub.f32 0.0, %v540_v18  ;;  %v828_v42 = vpop.eup %827  ;;  %837 = vlog2.f32 %v376_v28  ;;  %v336_v41 = vmul.f32 0.6931472, %v826_v31  ;;  %v427_v20 = vand.u32 2147483647, %v1169_v26 }
  0xdc   : > { %v495_v30 = vand.u32 2147483647, %v493_v24  ;;  %v830_v47 = vpop.eup %829  ;;  %v327_v45 = vmul.f32 0.6931472, %v828_v42  ;;  %v425_v22 = vadd.f32 1.0, %v424_v5  ;;  %v565_v2 = vmin.f32 %v537_v14, 0.0 }
  0xdd   : > { %v545_v40 = vmul.f32 1.442695, %v542_v23  ;;  %v1190_v54 = vpop.eup %831  ;;  %v369_v4 = vmul.f32 0.6931472, %v830_v47  ;;  %v342_v17 = vsel %vm1192_vm0, %v339_v39, %v336_v41  ;;  %v380_v23 = vadd.f32 1.0, %v379_v7 }
  0xde   : > { %v497_v56 = vsub.f32 0.0, %v495_v30  ;;  %v1196_v59 = vpop.eup %833  ;;  %v412_v0 = vadd.f32 1.0, %v1190_v54  ;;  %v333_v18 = vsel %vm1200_vm1, %v330_v55, %v327_v45  ;;  %v346_v29 = vsub.f32 %v342_v17, %v344_v25 }
  0xdf   : > { %839 = vpow2.f32 %v545_v40  ;;  %v466_v8 = vadd.f32 1.0, %v1196_v59  ;;  %v375_v21 = vsel %vm1213_vm2, %v372_v9, %v369_v4  ;;  %v1239_v30 = vsub.f32 %v333_v18, %v343_v38 }
  0xe0   : > { %841 = vlog2.f32 %v421_v49  ;;  %v1208_v6 = vpop.eup %835  ;;  %v500_v1 = vmul.f32 1.442695, %v497_v56  ;;  %v415_v31 = vmul.f32 -0.5, %v1190_v54  ;;  %v539_v32 = vand.u32 2147483647, %v537_v14 }
  0xe1   : > { %843 = vpow2.f32 %v498_v36  ;;  %v838_v15 = vpop.eup %837  ;;  %v457_v57 = vadd.f32 1.0, %v1208_v6  ;;  %v1246_v53 = vsub.f32 %v375_v21, %v385_v43  ;;  %vm1248_vm3 = vcmp.lt.f32.partialorder %v427_v20, 0.0004427343 }
  0xe2   : > { %845 = vpow2.f32 %v500_v1  ;;  %v378_v40 = vmul.f32 0.6931472, %v838_v15  ;;  %v418_v33 = vand.u32 2147483647, %v1190_v54  ;;  %v469_v25 = vmul.f32 -0.5, %v1196_v59 }
  0xe3   : > { %847 = vlog2.f32 %v412_v0  ;;  %v541_v38 = vsub.f32 0.0, %v539_v32  ;;  %v426_v47 = vmul.f32 %v1169_v26, %v425_v22  ;;  %v381_v43 = vmul.f32 %v1164_v19, %v380_v23 }
  0xe4   : > { %849 = vlog2.f32 %v466_v8  ;;  %vm1257_vm4 = vcmp.lt.f32.partialorder %v382_v27, 0.0004427343  ;;  %v416_v36 = vadd.f32 1.0, %v415_v31  ;;  %v460_v45 = vmul.f32 -0.5, %v1208_v6 }
  0xe5   : > { %v1227_v3 = vpop.eup %839  ;;  %851 = vlog2.f32 %v457_v57  ;;  %v543_v48 = vmul.f32 1.442695, %v541_v38  ;;  %v384_v41 = vsel %vm1257_vm4, %v381_v43, %v378_v40  ;;  %vm1265_vm5 = vcmp.lt.f32.partialorder %v418_v33, 0.0004427343 }
  0xe6   : > { %v842_v28 = vpop.eup %841  ;;  %v556_v42 = vadd.f32 1.0, %v1227_v3  ;;  %v470_v55 = vadd.f32 1.0, %v469_v25  ;;  %v472_v0 = vand.u32 2147483647, %v1196_v59  ;;  %v388_v8 = vsub.f32 %v384_v41, %v1186_v52 }
  0xe7   : > { %v1244_v37 = vpop.eup %843  ;;  %v423_v46 = vmul.f32 0.6931472, %v842_v28  ;;  %v417_v12 = vmul.f32 %v1190_v54, %v416_v36  ;;  %v461_v15 = vadd.f32 1.0, %v460_v45  ;;  %v463_v17 = vand.u32 2147483647, %v1208_v6 }
  0xe8   : > { %v846_v44 = vpop.eup %845  ;;  %v502_v56 = vadd.f32 1.0, %v1244_v37  ;;  %853 = vlog2.f32 %v556_v42  ;;  %v505_v1 = vmul.f32 -0.5, %v1244_v37  ;;  %v471_v20 = vmul.f32 %v1196_v59, %v470_v55 }
  0xe9   : > { %v848_v34 = vpop.eup %847  ;;  %v511_v39 = vadd.f32 1.0, %v846_v44  ;;  %v514_v26 = vmul.f32 -0.5, %v846_v44  ;;  %v429_v4 = vsel %vm1248_vm3, %v426_v47, %v423_v46  ;;  %v559_v21 = vmul.f32 -0.5, %v1227_v3 }
  0xea   : > { %v850_v60 = vpop.eup %849  ;;  %v414_v5 = vmul.f32 0.6931472, %v848_v34  ;;  %v573_v57 = vshrl.u32 %v572_v62, 7  ;;  %v517_v22 = vand.u32 2147483647, %v846_v44  ;;  %v433_v52 = vsub.f32 %v429_v4, %v1182_v50 }
  0xeb   : > { %855 = vlog2.f32 %v511_v39  ;;  %v852_v7 = vpop.eup %851  ;;  %v468_v9 = vmul.f32 0.6931472, %v850_v60  ;;  %v515_v18 = vadd.f32 1.0, %v514_v26  ;;  %vm1279_vm6 = vcmp.lt.f32.partialorder %v472_v0, 0.0004427343 }
  0xec   : > { %857 = vpow2.f32 %v543_v48  ;;  %v459_v27 = vmul.f32 0.6931472, %v852_v7  ;;  %v521_v54 = vmin.f32 %v493_v24, 0.0  ;;  %v390_v32 = vadd.f32 %v388_v8, %v346_v29 }
  0xed   : > { %859 = vlog2.f32 %v502_v56  ;;  %v420_v59 = vsel %vm1265_vm5, %v417_v12, %v414_v5  ;;  %v506_v58 = vadd.f32 1.0, %v505_v1  ;;  %v474_v40 = vsel %vm1279_vm6, %v471_v20, %v468_v9 }
  0xee   : > { %v854_v23 = vpop.eup %853  ;;  %v462_v50 = vmul.f32 %v1208_v6, %v461_v15  ;;  %vm1290_vm7 = vcmp.lt.f32.partialorder %v463_v17, 0.0004427343  ;;  %v516_v16 = vmul.f32 %v846_v44, %v515_v18  ;;  %v560_v29 = vadd.f32 1.0, %v559_v21 }
  0xef   : > { %v562_v38 = vand.u32 2147483647, %v1227_v3  ;;  %vm518_vm8 = vcmp.lt.f32.partialorder %v517_v22, 0.0004427343  ;;  %v478_v43 = vsub.f32 %v474_v40, %v1234_v61  ;;  %v432_v34 = vsub.f32 %v420_v59, %v1188_v35 }
  0xf0   : > { %v465_v47 = vsel %vm1290_vm7, %v462_v50, %v459_v27  ;;  %v508_v44 = vand.u32 2147483647, %v1244_v37  ;;  %v558_v36 = vmul.f32 0.6931472, %v854_v23  ;;  %v389_v56 = vadd.f32 %v1246_v53, %v1239_v30 }
  0xf1   : > { %v856_v31 = vpop.eup %855  ;;  %v435_v48 = vadd.f32 %v433_v52, %v390_v32  ;;  %v477_v61 = vsub.f32 %v465_v47, %v1219_v13  ;;  %v561_v35 = vmul.f32 %v1227_v3, %v560_v29  ;;  %v574_v41 = vadd.s32 8, %v573_v57 }
  0xf2   : > { %v858_v42 = vpop.eup %857  ;;  %v513_v25 = vmul.f32 0.6931472, %v856_v31  ;;  %v575_v45 = vstv %s722_s10  ;;  %v507_v26 = vmul.f32 %v1244_v37, %v506_v58  ;;  %vm563_vm9 = vcmp.lt.f32.partialorder %v562_v38, 0.0004427343 }
  0xf3   : > { %v860_v24 = vpop.eup %859  ;;  %v547_v46 = vadd.f32 1.0, %v858_v42  ;;  %v550_v49 = vmul.f32 -0.5, %v858_v42  ;;  %v480_v19 = vadd.f32 %v478_v43, %v435_v48  ;;  %v434_v53 = vadd.f32 %v432_v34, %v389_v56 }
  0xf4   : > { %v519_v6 = vsel %vm518_vm8, %v516_v16, %v513_v25  ;;  %v504_v39 = vmul.f32 0.6931472, %v860_v24  ;;  %vm509_vm10 = vcmp.lt.f32.partialorder %v508_v44, 0.0004427343  ;;  %v564_v55 = vsel %vm563_vm9, %v561_v35, %v558_v36 }
  0xf5   : > { %861 = vlog2.f32 %v547_v46  ;;  %v523_v60 = vsub.f32 %v519_v6, %v521_v54  ;;  %v551_v30 = vadd.f32 1.0, %v550_v49  ;;  %v553_v62 = vand.u32 2147483647, %v858_v42 }
  0xf6   : > { %v510_v4 = vsel %vm509_vm10, %v507_v26, %v504_v39  ;;  %v566_v5 = vmin.f32 %v538_v11, 0.0  ;;  %v520_v3 = vmin.f32 %v492_v10, 0.0  ;;  %v479_v37 = vadd.f32 %v477_v61, %v434_v53 }
  0xf7   : > { %v525_v0 = vadd.f32 %v523_v60, %v480_v19  ;;  %v577_v7 = vadd.s32 %v575_v45, %v574_v41  ;;  %v576_v1 = vadd.s32 %v575_v45, %v573_v57  ;;  %v552_v12 = vmul.f32 %v858_v42, %v551_v30 }
  0xf8   : > { %v568_v8 = vsub.f32 %v564_v55, %v566_v5  ;;  %v522_v15 = vsub.f32 %v510_v4, %v520_v3  ;;  %vm554_vm11 = vcmp.lt.f32.partialorder %v553_v62, 0.0004427343 }
  0xf9   : > { %vm579_vm12 = vcmp.lt.s32.totalorder %v577_v7, 20  ;;  %vm578_vm13 = vcmp.lt.s32.totalorder %v576_v1, 20 }
  0xfa   : > { %v570_v11 = vadd.f32 %v568_v8, %v525_v0  ;;  %v524_v18 = vadd.f32 %v522_v15, %v479_v37 }
  0xfb   : > { %v862_v13 = vpop.eup %861 }
  0xfc   : > { %v549_v9 = vmul.f32 0.6931472, %v862_v13  ;;  %v581_v10 = vsel %vm579_vm12, %v570_v11, 0.0 }
  0xfd   : > { %584 = vst.msk [vmem:[%s301_s8 + $0x8] sm:$0xff] %vm582_vm14, %v581_v10 }
  0xfe   : > { %v555_v17 = vsel %vm554_vm11, %v552_v12, %v549_v9 }
  0xff   : > { %v567_v20 = vsub.f32 %v555_v17, %v565_v2 }
 0x101   : > { %v569_v51 = vadd.f32 %v567_v20, %v524_v18 }
 0x103   : > { %v580_v21 = vsel %vm578_vm13, %v569_v51, 0.0 }
 0x104   : > { %583 = vst.msk [vmem:[%s301_s8] sm:$0xff] %vm582_vm14, %v580_v21 }
 0x105 PF: > { %p16_p6 = scmp.ge.s32.totalorder %s1009_s17, 4   ;;  %s1362_s12 = smov %s949_s13 }
 0x106   : > { %s1363_s13 = smov %s953_s14  ;;  %s1364_s14 = smov %s1019_s20 }
 0x107   : > { %s1365_s15 = smov %s1009_s17  ;;  %18 = sbr.rel (!%p16_p6) target bundleno = 5 (0x5), region = 105 }
 0x10c   :  { %607 = vsyncpa [#allocation3], 1 }
 0x10d   :  { %609 = vsyncpa [#allocation3 + $0x1], 1 }
 0x10e   :  { %610 = vsyncpa [#allocation5], 1 }
 0x10f   :  { %612 = vsyncpa [#allocation5 + $0x1], 1 }

</bundles_post_ra>
